<compile_context>
chip_gen: v6e
topology: v6e:2x2x1
jax: 0.10.0
libtpu: 0.0.40
codegen_flags: <defaults>
</compile_context>

<pallas_src>
import jax
import jax.numpy as jnp
from jax import lax
from jax.experimental import pallas as pl
from jax.experimental.pallas import tpu as pltpu


def _make_ce_kernel(n_valid: int):
    """Kernel closure over the true (unpadded) batch size."""

    def kernel(logits_ref, tgt_ref, out_ref):
        i = pl.program_id(0)

        x_nat = logits_ref[...]                                # (TM, C) native dtype
        x = x_nat.astype(jnp.float32)                          # f32 for max/exp/log
        tm, c = x.shape

        # Numerically-stable log-sum-exp along the class (lane) axis.
        m = jnp.max(x, axis=-1, keepdims=True)                 # (TM, 1)
        lse = jnp.log(jnp.sum(jnp.exp(x - m), axis=-1, keepdims=True))  # (TM, 1)

        # Gather the target logit via lane-index compare on the NATIVE tile; the
        # masked row has a single nonzero so the lane-sum is exact in any dtype.
        tgt = tgt_ref[...]                                     # (TM, 1) int32
        col = lax.broadcasted_iota(jnp.int32, (tm, c), 1)      # (TM, C)
        picked = jnp.sum(
            jnp.where(col == tgt, x_nat, jnp.zeros_like(x_nat)),
            axis=-1, keepdims=True).astype(jnp.float32)        # (TM, 1)

        # Per-row negative log-likelihood; zero out batch-padding rows.
        nll = (m + lse) - picked                               # (TM, 1)
        row = i * tm + lax.broadcasted_iota(jnp.int32, (tm, 1), 0)
        out_ref[...] = jnp.where(row < n_valid, nll, 0.0)

    return kernel


def _vmem_capacity_bytes() -> int:
    """Physical VMEM per TensorCore; conservative fallback if the query fails."""
    try:
        cap = getattr(pltpu.get_tpu_info(), "vmem_capacity_bytes", None)
        if cap:
            return int(cap)
    except Exception:
        pass
    return 64 * 1024 * 1024          # v7x per-core size: safe everywhere


def _choose_tm(n: int, c: int, itemsize: int, sub: int, vmem_cap: int) -> int:
    """Pick batch-tile rows from a VMEM byte budget (no hard row cap)."""
    c_pad = ((c + 127) // 128) * 128                 # lane padding of the class axis
    # Per-row VMEM bytes: 2 double-buffered native logits tiles + f32 upcast +
    # one f32 exp temporary + lane-padded (row,1) target(i32)/output(f32) blocks.
    per_row = c_pad * (2 * itemsize + 2 * 4) + 4 * 512
    budget = min(vmem_cap // 2, 48 * 1024 * 1024)
    tm = max(sub, (budget // per_row) // sub * sub)
    n_sub = ((n + sub - 1) // sub) * sub             # never pad batch beyond one tile
    return min(tm, n_sub)


def cross_entropy_loss(logits, targets, *, tm=None):
    """logits: (N, C) float array, targets: (N,) int array -> scalar f32 mean loss."""
    n, c = logits.shape
    itemsize = jnp.dtype(logits.dtype).itemsize
    sub = max(8, 32 // itemsize)                     # sublane packing: f32->8, bf16->16
    vmem_cap = _vmem_capacity_bytes()

    if tm is None:
        tm = _choose_tm(n, c, itemsize, sub, vmem_cap)
    else:
        tm = max(sub, (tm // sub) * sub)

    n_pad = ((n + tm - 1) // tm) * tm
    n_grid = n_pad // tm

    tgt = targets.astype(jnp.int32).reshape(n, 1)
    if n_pad != n:
        logits = jnp.pad(logits, ((0, n_pad - n), (0, 0)))
        tgt = jnp.pad(tgt, ((0, n_pad - n), (0, 0)))

    nll = pl.pallas_call(
        _make_ce_kernel(n),
        out_shape=jax.ShapeDtypeStruct((n_pad, 1), jnp.float32),
        grid_spec=pltpu.PrefetchScalarGridSpec(
            num_scalar_prefetch=0,
            grid=(n_grid,),
            in_specs=[
                pl.BlockSpec((tm, c), lambda i: (i, 0)),   # logits tile, native dtype
                pl.BlockSpec((tm, 1), lambda i: (i, 0)),   # targets tile
            ],
            out_specs=pl.BlockSpec((tm, 1), lambda i: (i, 0)),  # per-row NLL
        ),
        compiler_params=pltpu.CompilerParams(
            dimension_semantics=("parallel",),       # batch tiles are independent
            vmem_limit_bytes=int(vmem_cap * 3 // 4),
        ),
    )(logits, tgt)

    # Final reduction in f32 in the wrapper (padded rows are already zero).
    return jnp.sum(nll) / jnp.float32(n)


def _reference(logits, targets):
    logp = jax.nn.log_softmax(logits.astype(jnp.float32), axis=-1)
    return -jnp.mean(logp[jnp.arange(logits.shape[0]), targets])


if __name__ == "__main__":
    key = jax.random.PRNGKey(0)

    # Primary small case (module forward: output=(N, C), target=(N,)).
    k1, k2 = jax.random.split(key)
    N, C = 8, 32
    logits = jax.random.normal(k1, (N, C), dtype=jnp.float32)
    targets = jax.random.randint(k2, (N,), 0, C, dtype=jnp.int32)
    v1 = cross_entropy_loss(logits, targets)
    jax.block_until_ready(v1)
    assert jnp.allclose(v1, _reference(logits, targets), atol=1e-5, rtol=1e-5), v1

    # Batch not a multiple of the tile; force a small TM to exercise the
    # multi-tile ("parallel") grid + padded-row masking path.
    k3, k4 = jax.random.split(k1)
    N2, C2 = 37, 50
    logits2 = jax.random.normal(k3, (N2, C2), dtype=jnp.float32)
    targets2 = jax.random.randint(k4, (N2,), 0, C2, dtype=jnp.int32)
    v2 = cross_entropy_loss(logits2, targets2, tm=16)
    jax.block_until_ready(v2)
    assert jnp.allclose(v2, _reference(logits2, targets2), atol=1e-5, rtol=1e-5), v2

    # Same case with the auto-sized TM (single tile).
    v2b = cross_entropy_loss(logits2, targets2)
    jax.block_until_ready(v2b)
    assert jnp.allclose(v2b, _reference(logits2, targets2), atol=1e-5, rtol=1e-5), v2b

    # bf16 logits stay bf16 through the DMA; upcast happens inside the kernel.
    k5, k6 = jax.random.split(k3)
    N3, C3 = 24, 256
    logits3 = jax.random.normal(k5, (N3, C3), dtype=jnp.float32).astype(jnp.bfloat16)
    targets3 = jax.random.randint(k6, (N3,), 0, C3, dtype=jnp.int32)
    v3 = cross_entropy_loss(logits3, targets3)
    jax.block_until_ready(v3)
    assert jnp.allclose(v3, _reference(logits3, targets3), atol=1e-4, rtol=1e-4), v3

    print("KERNEL_OK")
</pallas_src>

<mosaic_0001>
module attributes {stable_mosaic.version = 11 : i64} {
  func.func @kernel(%arg0: i32, %arg1: memref<8x32xf32, #tpu.memory_space<vmem>>, %arg2: memref<8x1xi32, #tpu.memory_space<vmem>>, %arg3: memref<8x1xf32, #tpu.memory_space<vmem>>) attributes {dimension_semantics = [#tpu.dimension_semantics<parallel>], iteration_bounds = array<i64: 1>, scalar_prefetch = 0 : i64, scratch_operands = 0 : i64, tpu.core_type = #tpu.core_type<tc>, window_params = [{transform_indices = @transform_0, window_bounds = array<i64: 8, 32>}, {transform_indices = @transform_1, window_bounds = array<i64: 8, 1>}, {transform_indices = @transform_2, window_bounds = array<i64: 8, 1>}]} {
    %c0 = arith.constant 0 : index
    %c0_0 = arith.constant 0 : index
    %0 = vector.load %arg1[%c0, %c0_0] : memref<8x32xf32, #tpu.memory_space<vmem>>, vector<8x32xf32>
    %cst = arith.constant dense<0xFF800000> : vector<8xf32>
    %1 = vector.multi_reduction <maximumf>, %0, %cst [1] : vector<8x32xf32> to vector<8xf32>
    %2 = vector.shape_cast %1 : vector<8xf32> to vector<8x1xf32>
    %3 = vector.broadcast %2 : vector<8x1xf32> to vector<8x32xf32>
    %4 = arith.subf %0, %3 : vector<8x32xf32>
    %5 = math.exp %4 : vector<8x32xf32>
    %cst_1 = arith.constant dense<0.000000e+00> : vector<8xf32>
    %6 = vector.multi_reduction <add>, %5, %cst_1 [1] : vector<8x32xf32> to vector<8xf32>
    %7 = vector.shape_cast %6 : vector<8xf32> to vector<8x1xf32>
    %8 = math.log %7 : vector<8x1xf32>
    %c0_2 = arith.constant 0 : index
    %c0_3 = arith.constant 0 : index
    %9 = vector.load %arg2[%c0_2, %c0_3] : memref<8x1xi32, #tpu.memory_space<vmem>>, vector<8x1xi32>
    %10 = tpu.iota {dimensions = array<i32: 1>} : vector<8x32xi32>
    %11 = vector.broadcast %9 : vector<8x1xi32> to vector<8x32xi32>
    %12 = arith.cmpi eq, %10, %11 : vector<8x32xi32>
    %cst_4 = arith.constant 0.000000e+00 : f32
    %13 = vector.broadcast %cst_4 : f32 to vector<8x32xf32>
    %14 = arith.select %12, %0, %13 : vector<8x32xi1>, vector<8x32xf32>
    %cst_5 = arith.constant dense<0.000000e+00> : vector<8xf32>
    %15 = vector.multi_reduction <add>, %14, %cst_5 [1] : vector<8x32xf32> to vector<8xf32>
    %16 = vector.shape_cast %15 : vector<8xf32> to vector<8x1xf32>
    %17 = arith.addf %2, %8 : vector<8x1xf32>
    %18 = arith.subf %17, %16 : vector<8x1xf32>
    %c8_i32 = arith.constant 8 : i32
    %19 = arith.muli %arg0, %c8_i32 : i32
    %20 = tpu.iota {dimensions = array<i32: 0>} : vector<8x1xi32>
    %21 = vector.broadcast %19 : i32 to vector<8x1xi32>
    %22 = arith.addi %21, %20 : vector<8x1xi32>
    %c8_i32_6 = arith.constant 8 : i32
    %23 = vector.broadcast %c8_i32_6 : i32 to vector<8x1xi32>
    %24 = arith.cmpi slt, %22, %23 : vector<8x1xi32>
    %cst_7 = arith.constant 0.000000e+00 : f32
    %25 = vector.broadcast %cst_7 : f32 to vector<8x1xf32>
    %26 = arith.select %24, %18, %25 : vector<8x1xi1>, vector<8x1xf32>
    %c0_8 = arith.constant 0 : index
    %c0_9 = arith.constant 0 : index
    %27 = vector.load %arg3[%c0_8, %c0_9] : memref<8x1xf32, #tpu.memory_space<vmem>>, vector<8x1xf32>
    tpu.vector_store %arg3[%c0_8, %c0_9], %26 {strides = array<i32>} : memref<8x1xf32, #tpu.memory_space<vmem>>, vector<8x1xf32>,
    return
  }
  func.func @transform_0(%arg0: i32) -> (i32, i32) {
    %c0_i32 = arith.constant 0 : i32
    %c0_i32_0 = arith.constant 0 : i32
    return %arg0, %c0_i32 : i32, i32
  }
  func.func @transform_1(%arg0: i32) -> (i32, i32) {
    %c0_i32 = arith.constant 0 : i32
    %c0_i32_0 = arith.constant 0 : i32
    return %arg0, %c0_i32 : i32, i32
  }
  func.func @transform_2(%arg0: i32) -> (i32, i32) {
    %c0_i32 = arith.constant 0 : i32
    %c0_i32_0 = arith.constant 0 : i32
    return %arg0, %c0_i32 : i32, i32
  }
}

</mosaic_0001>

<bundles_post_ra>
// kernel: tpu_custom_call.1
= control target key start
LH: loop header
LB: loop body
LE: loop exit
PB: predicated region body
PF: predicated region fallthrough
CT: control target
= control target key end

     0   :  { %vm12_vm0 = vcmask 261120   ;;  %v56_v1 = vmov 0   ;;  %v25_v7 = vlaneseq  ;;  %vm44_vm2 = vcmask 7168   ;;  %s84_s0 = inlined_call_operand.vmem [shape: f32[8,32], index: 0, kind: input, shape index: {}]   ;;  %s85_s1 = inlined_call_operand.vmem [shape: s32[8,1], index: 1, kind: input, shape index: {}]   ;;  %s86_s2 = inlined_call_operand.vmem [shape: f32[8,1], index: 2, kind: output, shape index: {}]  }
   0x1   :  { %v11_v0 = vld [vmem:[%s84_s0] sm:$0xff]  ;;  %51 = vset.pattern.permute.xlu0 %v56_v1 }
   0x2   :  { %v13_v2 = vsel %vm12_vm0, %v11_v0, -inf  ;;  %v24_v3 = vld [vmem:[%s85_s1] sm:$0xff]  ;;  %v26_v8 = vand.u32 127, %v25_v7 }
   0x3   :  { %14 = vmax.xlane.f32.xlu0 %v13_v2 }
  0x19   :  { %28 = vperm.xlu0 %51, %v24_v3  }
  0x8c   :  { %v15_v4 = vpop.xlane.xlu0 %14 }
  0x8d   :  { %v16_v5 = vsub.f32 %v11_v0, %v15_v4 }
  0x8f   :  { %v17_v6 = vmul.f32 1.442695, %v16_v5 }
  0x91   :  { %52 = vpow2.f32 %v17_v6 }
  0x94   :  { %v29_v9 = vpop.permute.xlu0 %28 }
  0x95   :  { %vm30_vm1 = vcmp.eq.s32.totalorder %v26_v8, %v29_v9 }
  0x96   :  { %v31_v11 = vsel %vm30_vm1, %v11_v0, 0.0 }
  0x97   :  { %v32_v13 = vsel %vm12_vm0, %v31_v11, 0.0 }
  0x9e   :  { %v53_v10 = vpop.eup %52 }
  0x9f   :  { %v19_v12 = vsel %vm12_vm0, %v53_v10, 0.0 }
  0xa0   :  { %20 = vadd.xlane.f32.xlu1 %v19_v12 }
  0xa4   :  { %33 = vadd.xlane.f32.xlu1 %v32_v13 }
 0x129   :  { %v21_v14 = vpop.xlane.xlu1 %20 }
 0x12a   :  { %54 = vlog2.f32 %v21_v14 }
 0x12d   :  { %v34_v17 = vpop.xlane.xlu1 %33 }
 0x137   :  { %v55_v15 = vpop.eup %54 }
 0x138   :  { %v23_v16 = vmul.f32 0.6931472, %v55_v15 }
 0x13a   :  { %v35_v18 = vadd.f32 %v23_v16, %v15_v4 }
 0x13c   :  { %v36_v19 = vsub.f32 %v35_v18, %v34_v17 }
 0x13e   :  { %45 = vst.msk [vmem:[%s86_s2] sm:$0xff] %vm44_vm2, %v36_v19 }

</bundles_post_ra>
